<compile_context>
chip_gen: v5e
topology: v5e:2x2
jax: 0.10.0
libtpu: 0.0.40
codegen_flags: <defaults>
</compile_context>

<pallas_src>
import functools

import jax
import jax.numpy as jnp
from jax import lax
from jax.experimental import pallas as pl
from jax.experimental.pallas import tpu as pltpu


# ---- LIFParameters defaults (norse.torch.functional.lif.LIFParameters) ----
TAU_SYN_INV = 200.0   # 1/tau_syn
TAU_MEM_INV = 100.0   # 1/tau_mem
V_LEAK = 0.0
V_TH = 1.0
V_RESET = 0.0
DT = 0.001

_LANE = 128
_MIB = 1 << 20


def _round_up(x, m):
    return ((x + m - 1) // m) * m


def _tpu_vmem_capacity_bytes():
    try:
        cap = getattr(pltpu.get_tpu_info(), "vmem_capacity_bytes", None)
        if cap:
            return int(cap)
    except Exception:
        pass
    return 64 * _MIB   # v7x floor: most conservative per-core budget


def _is_v7x():
    try:
        return "v7" in jax.devices()[0].device_kind.lower()
    except Exception:
        return False


def _vmem_footprint_bytes(tc, tb, n_in_p, h_p, x_isize, w_isize, o_isize,
                          has_state):
    x_blk = tc * tb * n_in_p * x_isize                 # double-buffered
    zseq_blk = tc * tb * h_p * o_isize                 # double-buffered
    fin_blk = tb * h_p * o_isize                       # 3 outputs
    weights = (n_in_p * h_p + h_p * h_p) * w_isize     # Buffered(1)
    state_in = (3 * tb * h_p * 4) if has_state else 0  # Buffered(1)
    scratch = tc * tb * h_p * 4 + tb * h_p * (w_isize + 4 + 4)
    return (2 * x_blk + 2 * zseq_blk + 6 * fin_blk
            + weights + state_in + scratch)


def _const_spec(block_shape, index_map):
    """BlockSpec with single buffering (block never changes across the grid)."""
    try:
        return pl.BlockSpec(block_shape, index_map,
                            pipeline_mode=pl.Buffered(1))
    except Exception:          # older jax without pipeline_mode / Buffered
        return pl.BlockSpec(block_shape, index_map)


def _lif_layer_kernel(*refs, has_state, padded_time, final_local,
                      dt, tau_mem_inv, tau_syn_inv, v_leak, v_th, v_reset):
    if has_state:
        (x_ref, w_in_ref, w_rec_ref, z0_ref, v0_ref, i0_ref,
         z_seq_ref, z_fin_ref, v_fin_ref, i_fin_ref,
         xw_ref, z_sc, v_sc, i_sc) = refs
    else:
        (x_ref, w_in_ref, w_rec_ref,
         z_seq_ref, z_fin_ref, v_fin_ref, i_fin_ref,
         xw_ref, z_sc, v_sc, i_sc) = refs
        z0_ref = v0_ref = i0_ref = None

    tc, tb, n_in = x_ref.shape
    h = w_in_ref.shape[1]
    c = pl.program_id(1)                     # time-chunk index ("arbitrary")
    is_last_chunk = c == pl.num_programs(1) - 1

    @pl.when(c == 0)
    def _init_state():
        if has_state:
            z_sc[...] = z0_ref[...].astype(z_sc.dtype)
            v_sc[...] = v0_ref[...].astype(jnp.float32)
            i_sc[...] = i0_ref[...].astype(jnp.float32)
        else:
            # Default LIFCell state (z=0, v=v_leak, i=0), synthesised in-kernel.
            z_sc[...] = jnp.zeros(z_sc.shape, z_sc.dtype)
            v_sc[...] = jnp.full(v_sc.shape, v_leak, jnp.float32)
            i_sc[...] = jnp.zeros(i_sc.shape, jnp.float32)

    w_in = w_in_ref[...]       # (N_in_p, H_p), VMEM-resident, single-buffered
    w_rec = w_rec_ref[...]     # (H_p,   H_p)

    # State-independent input projection, batched over the whole time chunk:
    # one (tc*tb, N_in) @ (N_in, H) MXU matmul instead of tc small ones.
    xw_ref[...] = jnp.dot(
        x_ref[...].reshape(tc * tb, n_in), w_in,
        preferred_element_type=jnp.float32).reshape(tc, tb, h)

    beta_mem = dt * tau_mem_inv
    alpha_syn = 1.0 - dt * tau_syn_inv

    def step(tt, carry):
        z, v, i = carry
        # Membrane / synaptic dynamics (single Euler step).
        v_decayed = v + beta_mem * ((v_leak - v) + i)
        i_decayed = alpha_syn * i
        # Spike + reset: z in {0,1}, so (1-z)*v + z*v_reset folds to a select.
        # norse heaviside(v - v_th) == strict (v > v_th).
        spike = v_decayed > v_th
        z_new = spike.astype(z_sc.dtype)          # 0/1 exact in bf16
        v_new = jnp.where(spike, v_reset, v_decayed)
        # Current jump: pre-batched input projection + recurrent matmul (MXU).
        i_new = (i_decayed + xw_ref[tt]
                 + jnp.dot(z, w_rec, preferred_element_type=jnp.float32))
        z_seq_ref[tt] = z_new.astype(z_seq_ref.dtype)
        if padded_time:
            # The true last timestep sits inside the padded final chunk:
            # snapshot the state exactly there.
            @pl.when(jnp.logical_and(is_last_chunk, tt == final_local))
            def _snapshot_final():
                z_fin_ref[...] = z_new.astype(z_fin_ref.dtype)
                v_fin_ref[...] = v_new.astype(v_fin_ref.dtype)
                i_fin_ref[...] = i_new.astype(i_fin_ref.dtype)
        return z_new, v_new, i_new

    z, v, i = lax.fori_loop(0, tc, step, (z_sc[...], v_sc[...], i_sc[...]),
                            unroll=True)

    # Carry state to the next time chunk.
    z_sc[...] = z
    v_sc[...] = v
    i_sc[...] = i

    if not padded_time:
        @pl.when(is_last_chunk)
        def _write_final_state():
            z_fin_ref[...] = z.astype(z_fin_ref.dtype)
            v_fin_ref[...] = v.astype(v_fin_ref.dtype)
            i_fin_ref[...] = i.astype(i_fin_ref.dtype)


def lif_layer(x, w_in, w_rec, state=None, *,
              dt=DT, tau_mem_inv=TAU_MEM_INV, tau_syn_inv=TAU_SYN_INV,
              v_leak=V_LEAK, v_th=V_TH, v_reset=V_RESET,
              matmul_dtype=jnp.bfloat16, time_chunk=None, batch_tile=None):
    """Pallas implementation of norse LIFLayer.forward (recurrent LIFCell in time).

    Args:
      x:     (T, B, input_size) input spikes/currents.
      w_in:  (hidden_size, input_size) input weights.
      w_rec: (hidden_size, hidden_size) recurrent weights.
      state: optional LIFState-like tuple (z0, v0, i0), broadcastable to
             (B, hidden_size).  If None: z=0, v=v_leak, i=0 (as in norse).
    Returns:
      (z_seq of shape (T, B, hidden_size), (z_T, v_T, i_T)).
    """
    x = jnp.asarray(x)
    w_in = jnp.asarray(w_in)
    w_rec = jnp.asarray(w_rec)
    out_dtype = x.dtype
    T, B, N_in = x.shape
    H = w_in.shape[0]
    has_state = state is not None

    # Lane-dense padding of feature dims: unmasked stores + full MXU N/K.
    N_in_p = _round_up(N_in, _LANE)
    H_p = _round_up(H, _LANE)

    # Pre-transpose + zero-pad weights once; kept VMEM-resident in-kernel.
    w_in_t = jnp.zeros((N_in_p, H_p), matmul_dtype).at[:N_in, :H].set(
        w_in.T.astype(matmul_dtype))
    w_rec_t = jnp.zeros((H_p, H_p), matmul_dtype).at[:H, :H].set(
        w_rec.T.astype(matmul_dtype))

    x_isize = jnp.dtype(matmul_dtype).itemsize
    w_isize = x_isize
    o_isize = jnp.dtype(out_dtype).itemsize

    cap = _tpu_vmem_capacity_bytes()
    budget = int(cap * 0.75)

    # ---- batch tile: split across both TensorCores on v7x ----
    if batch_tile is not None:
        tb = int(batch_tile)
    else:
        tb = B if B <= 256 else 256
        if _is_v7x() and B >= 16:
            tb = min(tb, max(8, _round_up(pl.cdiv(B, 2), 8)))

    # ---- time chunk: largest that fits the VMEM budget, prefer divisors ----
    def fits(c):
        return _vmem_footprint_bytes(c, tb, N_in_p, H_p, x_isize, w_isize,
                                     o_isize, has_state) <= budget

    if time_chunk is not None:
        tc = int(time_chunk)
    else:
        tc = 1
        for cand in (32, 16, 8, 4, 2, 1):
            cand = min(cand, T)
            if fits(cand):
                tc = cand
                break
        for d in range(tc, max(tc // 2, 0), -1):   # avoid time padding if a
            if T % d == 0:                          # comparable divisor exists
                tc = d
                break

    nc = pl.cdiv(T, tc)
    nb = pl.cdiv(B, tb)
    T_pad = nc * tc
    padded_time = T_pad != T
    final_local = (T - 1) - (nc - 1) * tc

    # ---- prepare inputs (cast + pad in the wrapper, once) ----
    x_in = x.astype(matmul_dtype)
    if padded_time:
        x_in = jnp.pad(x_in, ((0, T_pad - T), (0, 0), (0, 0)))
    if N_in_p != N_in:
        x_in = jnp.pad(x_in, ((0, 0), (0, 0), (0, N_in_p - N_in)))

    x_spec = pl.BlockSpec((tc, tb, N_in_p), lambda b, c: (c, b, 0))
    w_in_spec = _const_spec((N_in_p, H_p), lambda b, c: (0, 0))
    w_rec_spec = _const_spec((H_p, H_p), lambda b, c: (0, 0))
    state_in_spec = _const_spec((tb, H_p), lambda b, c: (b, 0))
    z_seq_spec = pl.BlockSpec((tc, tb, H_p), lambda b, c: (c, b, 0))
    fin_spec = pl.BlockSpec((tb, H_p), lambda b, c: (b, 0))

    inputs = [x_in, w_in_t, w_rec_t]
    in_specs = [x_spec, w_in_spec, w_rec_spec]
    if has_state:
        z0, v0, i0 = state

        def prep(s):
            s = jnp.broadcast_to(jnp.asarray(s, jnp.float32), (B, H))
            return jnp.pad(s, ((0, 0), (0, H_p - H)))

        inputs += [prep(z0), prep(v0), prep(i0)]
        in_specs += [state_in_spec, state_in_spec, state_in_spec]

    kernel = functools.partial(
        _lif_layer_kernel, has_state=has_state, padded_time=padded_time,
        final_local=final_local, dt=dt, tau_mem_inv=tau_mem_inv,
        tau_syn_inv=tau_syn_inv, v_leak=v_leak, v_th=v_th, v_reset=v_reset)

    footprint = _vmem_footprint_bytes(tc, tb, N_in_p, H_p, x_isize, w_isize,
                                      o_isize, has_state)
    vmem_limit = int(min(max(footprint + 4 * _MIB, 32 * _MIB),
                         int(cap * 0.9)))

    cost = pl.CostEstimate(
        flops=T_pad * B * (2 * N_in_p * H_p + 2 * H_p * H_p + 10 * H_p),
        transcendentals=0,
        bytes_accessed=(T_pad * B * N_in_p * x_isize
                        + (N_in_p * H_p + H_p * H_p) * w_isize
                        + T_pad * B * H_p * o_isize
                        + (3 * B * H_p * 4 if has_state else 0)
                        + 3 * B * H_p * o_isize))

    z_seq, z_fin, v_fin, i_fin = pl.pallas_call(
        kernel,
        out_shape=(jax.ShapeDtypeStruct((T_pad, B, H_p), out_dtype),
                   jax.ShapeDtypeStruct((B, H_p), out_dtype),
                   jax.ShapeDtypeStruct((B, H_p), out_dtype),
                   jax.ShapeDtypeStruct((B, H_p), out_dtype)),
        grid_spec=pltpu.PrefetchScalarGridSpec(
            num_scalar_prefetch=0,
            grid=(nb, nc),
            in_specs=in_specs,
            out_specs=[z_seq_spec, fin_spec, fin_spec, fin_spec],
            scratch_shapes=[pltpu.VMEM((tc, tb, H_p), jnp.float32),   # x @ W_in
                            pltpu.VMEM((tb, H_p), matmul_dtype),      # z state
                            pltpu.VMEM((tb, H_p), jnp.float32),       # v state
                            pltpu.VMEM((tb, H_p), jnp.float32)]),     # i state
        compiler_params=pltpu.CompilerParams(
            dimension_semantics=("parallel", "arbitrary"),
            vmem_limit_bytes=vmem_limit),
        cost_estimate=cost,
    )(*inputs)

    # Strip feature / time padding.
    z_seq = z_seq[:T, :, :H]
    z_fin = z_fin[:, :H]
    v_fin = v_fin[:, :H]
    i_fin = i_fin[:, :H]
    return z_seq, (z_fin, v_fin, i_fin)


def _lif_layer_reference(x, w_in, w_rec, state=None, matmul_dtype=jnp.bfloat16):
    """Pure-JAX reference of LIFLayer.forward (lax.scan over lif_step)."""
    x = jnp.asarray(x)
    T, B, N_in = x.shape
    H = w_in.shape[0]
    f32 = jnp.float32
    if state is None:
        z0 = jnp.zeros((B, H), f32)
        v0 = jnp.full((B, H), V_LEAK, f32)
        i0 = jnp.zeros((B, H), f32)
    else:
        z0, v0, i0 = (jnp.broadcast_to(jnp.asarray(s, f32), (B, H))
                      for s in state)
    w_in_t = jnp.asarray(w_in).T.astype(matmul_dtype)
    w_rec_t = jnp.asarray(w_rec).T.astype(matmul_dtype)

    def step(carry, x_t):
        z, v, i = carry
        v_decayed = v + (DT * TAU_MEM_INV) * ((V_LEAK - v) + i)
        i_decayed = (1.0 - DT * TAU_SYN_INV) * i
        spike = v_decayed > V_TH
        z_new = spike.astype(f32)
        v_new = jnp.where(spike, V_RESET, v_decayed)
        i_new = (i_decayed
                 + jnp.dot(x_t.astype(matmul_dtype), w_in_t,
                           preferred_element_type=f32)
                 + jnp.dot(z.astype(matmul_dtype), w_rec_t,
                           preferred_element_type=f32))
        return (z_new, v_new, i_new), z_new

    (z_f, v_f, i_f), z_seq = lax.scan(step, (z0, v0, i0), x)
    cast = lambda a: a.astype(x.dtype)
    return cast(z_seq), (cast(z_f), cast(v_f), cast(i_f))


if __name__ == "__main__":
    key = jax.random.PRNGKey(0)
    kx, kwi, kwr, kz, kv, ki = jax.random.split(key, 6)

    # seq=8 timesteps, batch=2, input_size=16, hidden_size=32
    T, B, N_in, H = 8, 2, 16, 32
    x = jax.random.normal(kx, (T, B, N_in), dtype=jnp.float32)
    w_in = jax.random.normal(kwi, (H, N_in), dtype=jnp.float32) * (2.0 / H) ** 0.5
    w_rec = jax.random.normal(kwr, (H, H), dtype=jnp.float32) * (2.0 / H) ** 0.5

    # --- Case 1: default state (z=0, v=v_leak, i=0), synthesised in-kernel ---
    z_seq0, (zf0, vf0, if0) = lif_layer(x, w_in, w_rec, state=None)
    jax.block_until_ready((z_seq0, zf0, vf0, if0))
    rzs0, (rzf0, rvf0, rif0) = _lif_layer_reference(x, w_in, w_rec, state=None)
    assert z_seq0.shape == (T, B, H)
    assert jnp.allclose(z_seq0, rzs0, atol=1e-3), "z mismatch (default state)"
    assert jnp.allclose(zf0, rzf0, atol=1e-3), "z_fin mismatch (default state)"
    assert jnp.allclose(vf0, rvf0, atol=1e-3, rtol=1e-3), "v mismatch (default state)"
    assert jnp.allclose(if0, rif0, atol=1e-3, rtol=1e-3), "i mismatch (default state)"

    # --- Case 2: explicit nonzero state (reset + recurrent z@W_rec.T at t=0) ---
    z0 = (jax.random.uniform(kz, (B, H)) > 0.5).astype(jnp.float32)
    v0 = 0.5 + 0.5 * jax.random.normal(kv, (B, H), dtype=jnp.float32)
    i0 = jax.random.normal(ki, (B, H), dtype=jnp.float32)
    z_seq1, (zf1, vf1, if1) = lif_layer(x, w_in, w_rec, state=(z0, v0, i0))
    jax.block_until_ready((z_seq1, zf1, vf1, if1))
    rzs1, (rzf1, rvf1, rif1) = _lif_layer_reference(x, w_in, w_rec,
                                                    state=(z0, v0, i0))
    assert jnp.allclose(z_seq1, rzs1, atol=1e-3), "z mismatch (explicit state)"
    assert jnp.allclose(zf1, rzf1, atol=1e-3), "z_fin mismatch (explicit state)"
    assert jnp.allclose(vf1, rvf1, atol=1e-3, rtol=1e-3), "v mismatch (explicit state)"
    assert jnp.allclose(if1, rif1, atol=1e-3, rtol=1e-3), "i mismatch (explicit state)"

    # --- Case 3: T not divisible by the time chunk (padded time axis,
    #     multi-chunk state carry, in-loop final-state snapshot) ---
    x3 = x[:5]
    z_seq3, (zf3, vf3, if3) = lif_layer(x3, w_in, w_rec, state=None,
                                        time_chunk=4)
    jax.block_until_ready((z_seq3, zf3, vf3, if3))
    rzs3, (rzf3, rvf3, rif3) = _lif_layer_reference(x3, w_in, w_rec, state=None)
    assert z_seq3.shape == (5, B, H)
    assert jnp.allclose(z_seq3, rzs3, atol=1e-3), "z mismatch (padded time)"
    assert jnp.allclose(zf3, rzf3, atol=1e-3), "z_fin mismatch (padded time)"
    assert jnp.allclose(vf3, rvf3, atol=1e-3, rtol=1e-3), "v mismatch (padded time)"
    assert jnp.allclose(if3, rif3, atol=1e-3, rtol=1e-3), "i mismatch (padded time)"

    print("KERNEL_OK")
</pallas_src>

<mosaic_0001>
module attributes {stable_mosaic.version = 11 : i64} {
  func.func @_lif_layer_kernel(%arg0: i32, %arg1: i32, %arg2: memref<8x2x128xbf16, #tpu.memory_space<vmem>>, %arg3: memref<128x128xbf16, #tpu.memory_space<vmem>>, %arg4: memref<128x128xbf16, #tpu.memory_space<vmem>>, %arg5: memref<8x2x128xf32, #tpu.memory_space<vmem>>, %arg6: memref<2x128xf32, #tpu.memory_space<vmem>>, %arg7: memref<2x128xf32, #tpu.memory_space<vmem>>, %arg8: memref<2x128xf32, #tpu.memory_space<vmem>>, %arg9: memref<8x2x128xf32, #tpu.memory_space<vmem>>, %arg10: memref<2x128xbf16, #tpu.memory_space<vmem>>, %arg11: memref<2x128xf32, #tpu.memory_space<vmem>>, %arg12: memref<2x128xf32, #tpu.memory_space<vmem>>) attributes {dimension_semantics = [#tpu.dimension_semantics<parallel>, #tpu.dimension_semantics<arbitrary>], iteration_bounds = array<i64: 1, 1>, scalar_prefetch = 0 : i64, scratch_operands = 4 : i64, tpu.core_type = #tpu.core_type<tc>, window_params = [{transform_indices = @transform_0, window_bounds = array<i64: 8, 2, 128>}, {pipeline_mode = #tpu.pipeline_mode<synchronous>, transform_indices = @transform_1, window_bounds = array<i64: 128, 128>}, {pipeline_mode = #tpu.pipeline_mode<synchronous>, transform_indices = @transform_2, window_bounds = array<i64: 128, 128>}, {transform_indices = @transform_3, window_bounds = array<i64: 8, 2, 128>}, {transform_indices = @transform_4, window_bounds = array<i64: 2, 128>}, {transform_indices = @transform_5, window_bounds = array<i64: 2, 128>}, {transform_indices = @transform_6, window_bounds = array<i64: 2, 128>}]} {
    %c0_i32 = arith.constant 0 : i32
    %0 = arith.cmpi eq, %arg1, %c0_i32 : i32
    %c0_i32_0 = arith.constant 0 : i32
    %1 = arith.cmpi eq, %arg1, %c0_i32_0 : i32
    %2 = arith.extui %1 : i1 to i32
    %c0_i32_1 = arith.constant 0 : i32
    %3 = arith.cmpi ne, %2, %c0_i32_1 : i32
    scf.if %3 {
      %cst_105 = arith.constant 0.000000e+00 : bf16
      %227 = vector.broadcast %cst_105 : bf16 to vector<2x128xbf16>
      %c0_106 = arith.constant 0 : index
      %c0_107 = arith.constant 0 : index
      %228 = vector.load %arg10[%c0_106, %c0_107] : memref<2x128xbf16, #tpu.memory_space<vmem>>, vector<2x128xbf16>
      tpu.vector_store %arg10[%c0_106, %c0_107], %227 {strides = array<i32>} : memref<2x128xbf16, #tpu.memory_space<vmem>>, vector<2x128xbf16>,
      %cst_108 = arith.constant 0.000000e+00 : f32
      %229 = vector.broadcast %cst_108 : f32 to vector<2x128xf32>
      %c0_109 = arith.constant 0 : index
      %c0_110 = arith.constant 0 : index
      %230 = vector.load %arg11[%c0_109, %c0_110] : memref<2x128xf32, #tpu.memory_space<vmem>>, vector<2x128xf32>
      tpu.vector_store %arg11[%c0_109, %c0_110], %229 {strides = array<i32>} : memref<2x128xf32, #tpu.memory_space<vmem>>, vector<2x128xf32>,
      %cst_111 = arith.constant 0.000000e+00 : f32
      %231 = vector.broadcast %cst_111 : f32 to vector<2x128xf32>
      %c0_112 = arith.constant 0 : index
      %c0_113 = arith.constant 0 : index
      %232 = vector.load %arg12[%c0_112, %c0_113] : memref<2x128xf32, #tpu.memory_space<vmem>>, vector<2x128xf32>
      tpu.vector_store %arg12[%c0_112, %c0_113], %231 {strides = array<i32>} : memref<2x128xf32, #tpu.memory_space<vmem>>, vector<2x128xf32>,
    } else {
    }
    %c0 = arith.constant 0 : index
    %c0_2 = arith.constant 0 : index
    %4 = vector.load %arg3[%c0, %c0_2] : memref<128x128xbf16, #tpu.memory_space<vmem>>, vector<128x128xbf16>
    %c0_3 = arith.constant 0 : index
    %c0_4 = arith.constant 0 : index
    %5 = vector.load %arg4[%c0_3, %c0_4] : memref<128x128xbf16, #tpu.memory_space<vmem>>, vector<128x128xbf16>
    %c0_5 = arith.constant 0 : index
    %c0_6 = arith.constant 0 : index
    %c0_7 = arith.constant 0 : index
    %6 = vector.load %arg2[%c0_5, %c0_6, %c0_7] : memref<8x2x128xbf16, #tpu.memory_space<vmem>>, vector<8x2x128xbf16>
    %7 = vector.shape_cast %6 : vector<8x2x128xbf16> to vector<16x128xbf16>
    %cst = arith.constant dense<0.000000e+00> : vector<16x128xf32>
    %8 = tpu.matmul %7, %4, %cst {dimension_numbers = #tpu.dot_dimension_numbers<[1], [0], [0], [1], [0, 0, 1, 1], [], []>} : vector<16x128xbf16>, vector<128x128xbf16>, vector<16x128xf32> -> vector<16x128xf32>
    %9 = vector.shape_cast %8 : vector<16x128xf32> to vector<8x2x128xf32>
    %c0_8 = arith.constant 0 : index
    %c0_9 = arith.constant 0 : index
    %c0_10 = arith.constant 0 : index
    %10 = vector.load %arg9[%c0_8, %c0_9, %c0_10] : memref<8x2x128xf32, #tpu.memory_space<vmem>>, vector<8x2x128xf32>
    tpu.vector_store %arg9[%c0_8, %c0_9, %c0_10], %9 {strides = array<i32>} : memref<8x2x128xf32, #tpu.memory_space<vmem>>, vector<8x2x128xf32>,
    %c0_11 = arith.constant 0 : index
    %c0_12 = arith.constant 0 : index
    %11 = vector.load %arg10[%c0_11, %c0_12] : memref<2x128xbf16, #tpu.memory_space<vmem>>, vector<2x128xbf16>
    %c0_13 = arith.constant 0 : index
    %c0_14 = arith.constant 0 : index
    %12 = vector.load %arg11[%c0_13, %c0_14] : memref<2x128xf32, #tpu.memory_space<vmem>>, vector<2x128xf32>
    %c0_15 = arith.constant 0 : index
    %c0_16 = arith.constant 0 : index
    %13 = vector.load %arg12[%c0_15, %c0_16] : memref<2x128xf32, #tpu.memory_space<vmem>>, vector<2x128xf32>
    %c0_i32_17 = arith.constant 0 : i32
    %cst_18 = arith.constant 0.000000e+00 : f32
    %14 = vector.broadcast %cst_18 : f32 to vector<2x128xf32>
    %15 = arith.subf %14, %12 : vector<2x128xf32>
    %16 = arith.addf %15, %13 : vector<2x128xf32>
    %cst_19 = arith.constant 1.000000e-01 : f32
    %17 = vector.broadcast %cst_19 : f32 to vector<2x128xf32>
    %18 = arith.mulf %17, %16 : vector<2x128xf32>
    %19 = arith.addf %12, %18 : vector<2x128xf32>
    %cst_20 = arith.constant 8.000000e-01 : f32
    %20 = vector.broadcast %cst_20 : f32 to vector<2x128xf32>
    %21 = arith.mulf %20, %13 : vector<2x128xf32>
    %cst_21 = arith.constant 1.000000e+00 : f32
    %22 = vector.broadcast %cst_21 : f32 to vector<2x128xf32>
    %23 = arith.cmpf ogt, %19, %22 : vector<2x128xf32>
    %24 = arith.extui %23 : vector<2x128xi1> to vector<2x128xi32>
    %25 = arith.sitofp %24 : vector<2x128xi32> to vector<2x128xf32>
    %26 = arith.truncf %25 : vector<2x128xf32> to vector<2x128xbf16>
    %cst_22 = arith.constant 0.000000e+00 : f32
    %27 = vector.broadcast %cst_22 : f32 to vector<2x128xf32>
    %28 = arith.select %23, %27, %19 : vector<2x128xi1>, vector<2x128xf32>
    %29 = arith.index_cast %c0_i32_17 : i32 to index
    %c0_23 = arith.constant 0 : index
    %c0_24 = arith.constant 0 : index
    %30 = vector.load %arg9[%29, %c0_23, %c0_24] : memref<8x2x128xf32, #tpu.memory_space<vmem>>, vector<1x2x128xf32>
    %31 = vector.shape_cast %30 : vector<1x2x128xf32> to vector<2x128xf32>
    %32 = arith.addf %21, %31 : vector<2x128xf32>
    %cst_25 = arith.constant dense<0.000000e+00> : vector<2x128xf32>
    %33 = tpu.matmul %11, %5, %cst_25 {dimension_numbers = #tpu.dot_dimension_numbers<[1], [0], [0], [1], [0, 0, 1, 1], [], []>} : vector<2x128xbf16>, vector<128x128xbf16>, vector<2x128xf32> -> vector<2x128xf32>
    %34 = arith.addf %32, %33 : vector<2x128xf32>
    %35 = arith.extf %26 : vector<2x128xbf16> to vector<2x128xf32>
    %36 = arith.index_cast %c0_i32_17 : i32 to index
    %c0_26 = arith.constant 0 : index
    %c0_27 = arith.constant 0 : index
    %37 = vector.load %arg5[%36, %c0_26, %c0_27] : memref<8x2x128xf32, #tpu.memory_space<vmem>>, vector<1x2x128xf32>
    %38 = vector.shape_cast %37 : vector<1x2x128xf32> to vector<2x128xf32>
    %39 = vector.shape_cast %35 : vector<2x128xf32> to vector<1x2x128xf32>
    tpu.vector_store %arg5[%36, %c0_26, %c0_27], %39 {strides = array<i32>} : memref<8x2x128xf32, #tpu.memory_space<vmem>>, vector<1x2x128xf32>,
    %c1_i32 = arith.constant 1 : i32
    %cst_28 = arith.constant 0.000000e+00 : f32
    %40 = vector.broadcast %cst_28 : f32 to vector<2x128xf32>
    %41 = arith.subf %40, %28 : vector<2x128xf32>
    %42 = arith.addf %41, %34 : vector<2x128xf32>
    %cst_29 = arith.constant 1.000000e-01 : f32
    %43 = vector.broadcast %cst_29 : f32 to vector<2x128xf32>
    %44 = arith.mulf %43, %42 : vector<2x128xf32>
    %45 = arith.addf %28, %44 : vector<2x128xf32>
    %cst_30 = arith.constant 8.000000e-01 : f32
    %46 = vector.broadcast %cst_30 : f32 to vector<2x128xf32>
    %47 = arith.mulf %46, %34 : vector<2x128xf32>
    %cst_31 = arith.constant 1.000000e+00 : f32
    %48 = vector.broadcast %cst_31 : f32 to vector<2x128xf32>
    %49 = arith.cmpf ogt, %45, %48 : vector<2x128xf32>
    %50 = arith.extui %49 : vector<2x128xi1> to vector<2x128xi32>
    %51 = arith.sitofp %50 : vector<2x128xi32> to vector<2x128xf32>
    %52 = arith.truncf %51 : vector<2x128xf32> to vector<2x128xbf16>
    %cst_32 = arith.constant 0.000000e+00 : f32
    %53 = vector.broadcast %cst_32 : f32 to vector<2x128xf32>
    %54 = arith.select %49, %53, %45 : vector<2x128xi1>, vector<2x128xf32>
    %55 = arith.index_cast %c1_i32 : i32 to index
    %c0_33 = arith.constant 0 : index
    %c0_34 = arith.constant 0 : index
    %56 = vector.load %arg9[%55, %c0_33, %c0_34] : memref<8x2x128xf32, #tpu.memory_space<vmem>>, vector<1x2x128xf32>
    %57 = vector.shape_cast %56 : vector<1x2x128xf32> to vector<2x128xf32>
    %58 = arith.addf %47, %57 : vector<2x128xf32>
    %cst_35 = arith.constant dense<0.000000e+00> : vector<2x128xf32>
    %59 = tpu.matmul %26, %5, %cst_35 {dimension_numbers = #tpu.dot_dimension_numbers<[1], [0], [0], [1], [0, 0, 1, 1], [], []>} : vector<2x128xbf16>, vector<128x128xbf16>, vector<2x128xf32> -> vector<2x128xf32>
    %60 = arith.addf %58, %59 : vector<2x128xf32>
    %61 = arith.extf %52 : vector<2x128xbf16> to vector<2x128xf32>
    %62 = arith.index_cast %c1_i32 : i32 to index
    %c0_36 = arith.constant 0 : index
    %c0_37 = arith.constant 0 : index
    %63 = vector.load %arg5[%62, %c0_36, %c0_37] : memref<8x2x128xf32, #tpu.memory_space<vmem>>, vector<1x2x128xf32>
    %64 = vector.shape_cast %63 : vector<1x2x128xf32> to vector<2x128xf32>
    %65 = vector.shape_cast %61 : vector<2x128xf32> to vector<1x2x128xf32>
    tpu.vector_store %arg5[%62, %c0_36, %c0_37], %65 {strides = array<i32>} : memref<8x2x128xf32, #tpu.memory_space<vmem>>, vector<1x2x128xf32>,
    %c2_i32 = arith.constant 2 : i32
    %cst_38 = arith.constant 0.000000e+00 : f32
    %66 = vector.broadcast %cst_38 : f32 to vector<2x128xf32>
    %67 = arith.subf %66, %54 : vector<2x128xf32>
    %68 = arith.addf %67, %60 : vector<2x128xf32>
    %cst_39 = arith.constant 1.000000e-01 : f32
    %69 = vector.broadcast %cst_39 : f32 to vector<2x128xf32>
    %70 = arith.mulf %69, %68 : vector<2x128xf32>
    %71 = arith.addf %54, %70 : vector<2x128xf32>
    %cst_40 = arith.constant 8.000000e-01 : f32
    %72 = vector.broadcast %cst_40 : f32 to vector<2x128xf32>
    %73 = arith.mulf %72, %60 : vector<2x128xf32>
    %cst_41 = arith.constant 1.000000e+00 : f32
    %74 = vector.broadcast %cst_41 : f32 to vector<2x128xf32>
    %75 = arith.cmpf ogt, %71, %74 : vector<2x128xf32>
    %76 = arith.extui %75 : vector<2x128xi1> to vector<2x128xi32>
    %77 = arith.sitofp %76 : vector<2x128xi32> to vector<2x128xf32>
    %78 = arith.truncf %77 : vector<2x128xf32> to vector<2x128xbf16>
    %cst_42 = arith.constant 0.000000e+00 : f32
    %79 = vector.broadcast %cst_42 : f32 to vector<2x128xf32>
    %80 = arith.select %75, %79, %71 : vector<2x128xi1>, vector<2x128xf32>
    %81 = arith.index_cast %c2_i32 : i32 to index
    %c0_43 = arith.constant 0 : index
    %c0_44 = arith.constant 0 : index
    %82 = vector.load %arg9[%81, %c0_43, %c0_44] : memref<8x2x128xf32, #tpu.memory_space<vmem>>, vector<1x2x128xf32>
    %83 = vector.shape_cast %82 : vector<1x2x128xf32> to vector<2x128xf32>
    %84 = arith.addf %73, %83 : vector<2x128xf32>
    %cst_45 = arith.constant dense<0.000000e+00> : vector<2x128xf32>
    %85 = tpu.matmul %52, %5, %cst_45 {dimension_numbers = #tpu.dot_dimension_numbers<[1], [0], [0], [1], [0, 0, 1, 1], [], []>} : vector<2x128xbf16>, vector<128x128xbf16>, vector<2x128xf32> -> vector<2x128xf32>
    %86 = arith.addf %84, %85 : vector<2x128xf32>
    %87 = arith.extf %78 : vector<2x128xbf16> to vector<2x128xf32>
    %88 = arith.index_cast %c2_i32 : i32 to index
    %c0_46 = arith.constant 0 : index
    %c0_47 = arith.constant 0 : index
    %89 = vector.load %arg5[%88, %c0_46, %c0_47] : memref<8x2x128xf32, #tpu.memory_space<vmem>>, vector<1x2x128xf32>
    %90 = vector.shape_cast %89 : vector<1x2x128xf32> to vector<2x128xf32>
    %91 = vector.shape_cast %87 : vector<2x128xf32> to vector<1x2x128xf32>
    tpu.vector_store %arg5[%88, %c0_46, %c0_47], %91 {strides = array<i32>} : memref<8x2x128xf32, #tpu.memory_space<vmem>>, vector<1x2x128xf32>,
    %c3_i32 = arith.constant 3 : i32
    %cst_48 = arith.constant 0.000000e+00 : f32
    %92 = vector.broadcast %cst_48 : f32 to vector<2x128xf32>
    %93 = arith.subf %92, %80 : vector<2x128xf32>
    %94 = arith.addf %93, %86 : vector<2x128xf32>
    %cst_49 = arith.constant 1.000000e-01 : f32
    %95 = vector.broadcast %cst_49 : f32 to vector<2x128xf32>
    %96 = arith.mulf %95, %94 : vector<2x128xf32>
    %97 = arith.addf %80, %96 : vector<2x128xf32>
    %cst_50 = arith.constant 8.000000e-01 : f32
    %98 = vector.broadcast %cst_50 : f32 to vector<2x128xf32>
    %99 = arith.mulf %98, %86 : vector<2x128xf32>
    %cst_51 = arith.constant 1.000000e+00 : f32
    %100 = vector.broadcast %cst_51 : f32 to vector<2x128xf32>
    %101 = arith.cmpf ogt, %97, %100 : vector<2x128xf32>
    %102 = arith.extui %101 : vector<2x128xi1> to vector<2x128xi32>
    %103 = arith.sitofp %102 : vector<2x128xi32> to vector<2x128xf32>
    %104 = arith.truncf %103 : vector<2x128xf32> to vector<2x128xbf16>
    %cst_52 = arith.constant 0.000000e+00 : f32
    %105 = vector.broadcast %cst_52 : f32 to vector<2x128xf32>
    %106 = arith.select %101, %105, %97 : vector<2x128xi1>, vector<2x128xf32>
    %107 = arith.index_cast %c3_i32 : i32 to index
    %c0_53 = arith.constant 0 : index
    %c0_54 = arith.constant 0 : index
    %108 = vector.load %arg9[%107, %c0_53, %c0_54] : memref<8x2x128xf32, #tpu.memory_space<vmem>>, vector<1x2x128xf32>
    %109 = vector.shape_cast %108 : vector<1x2x128xf32> to vector<2x128xf32>
    %110 = arith.addf %99, %109 : vector<2x128xf32>
    %cst_55 = arith.constant dense<0.000000e+00> : vector<2x128xf32>
    %111 = tpu.matmul %78, %5, %cst_55 {dimension_numbers = #tpu.dot_dimension_numbers<[1], [0], [0], [1], [0, 0, 1, 1], [], []>} : vector<2x128xbf16>, vector<128x128xbf16>, vector<2x128xf32> -> vector<2x128xf32>
    %112 = arith.addf %110, %111 : vector<2x128xf32>
    %113 = arith.extf %104 : vector<2x128xbf16> to vector<2x128xf32>
    %114 = arith.index_cast %c3_i32 : i32 to index
    %c0_56 = arith.constant 0 : index
    %c0_57 = arith.constant 0 : index
    %115 = vector.load %arg5[%114, %c0_56, %c0_57] : memref<8x2x128xf32, #tpu.memory_space<vmem>>, vector<1x2x128xf32>
    %116 = vector.shape_cast %115 : vector<1x2x128xf32> to vector<2x128xf32>
    %117 = vector.shape_cast %113 : vector<2x128xf32> to vector<1x2x128xf32>
    tpu.vector_store %arg5[%114, %c0_56, %c0_57], %117 {strides = array<i32>} : memref<8x2x128xf32, #tpu.memory_space<vmem>>, vector<1x2x128xf32>,
    %c4_i32 = arith.constant 4 : i32
    %cst_58 = arith.constant 0.000000e+00 : f32
    %118 = vector.broadcast %cst_58 : f32 to vector<2x128xf32>
    %119 = arith.subf %118, %106 : vector<2x128xf32>
    %120 = arith.addf %119, %112 : vector<2x128xf32>
    %cst_59 = arith.constant 1.000000e-01 : f32
    %121 = vector.broadcast %cst_59 : f32 to vector<2x128xf32>
    %122 = arith.mulf %121, %120 : vector<2x128xf32>
    %123 = arith.addf %106, %122 : vector<2x128xf32>
    %cst_60 = arith.constant 8.000000e-01 : f32
    %124 = vector.broadcast %cst_60 : f32 to vector<2x128xf32>
    %125 = arith.mulf %124, %112 : vector<2x128xf32>
    %cst_61 = arith.constant 1.000000e+00 : f32
    %126 = vector.broadcast %cst_61 : f32 to vector<2x128xf32>
    %127 = arith.cmpf ogt, %123, %126 : vector<2x128xf32>
    %128 = arith.extui %127 : vector<2x128xi1> to vector<2x128xi32>
    %129 = arith.sitofp %128 : vector<2x128xi32> to vector<2x128xf32>
    %130 = arith.truncf %129 : vector<2x128xf32> to vector<2x128xbf16>
    %cst_62 = arith.constant 0.000000e+00 : f32
    %131 = vector.broadcast %cst_62 : f32 to vector<2x128xf32>
    %132 = arith.select %127, %131, %123 : vector<2x128xi1>, vector<2x128xf32>
    %133 = arith.index_cast %c4_i32 : i32 to index
    %c0_63 = arith.constant 0 : index
    %c0_64 = arith.constant 0 : index
    %134 = vector.load %arg9[%133, %c0_63, %c0_64] : memref<8x2x128xf32, #tpu.memory_space<vmem>>, vector<1x2x128xf32>
    %135 = vector.shape_cast %134 : vector<1x2x128xf32> to vector<2x128xf32>
    %136 = arith.addf %125, %135 : vector<2x128xf32>
    %cst_65 = arith.constant dense<0.000000e+00> : vector<2x128xf32>
    %137 = tpu.matmul %104, %5, %cst_65 {dimension_numbers = #tpu.dot_dimension_numbers<[1], [0], [0], [1], [0, 0, 1, 1], [], []>} : vector<2x128xbf16>, vector<128x128xbf16>, vector<2x128xf32> -> vector<2x128xf32>
    %138 = arith.addf %136, %137 : vector<2x128xf32>
    %139 = arith.extf %130 : vector<2x128xbf16> to vector<2x128xf32>
    %140 = arith.index_cast %c4_i32 : i32 to index
    %c0_66 = arith.constant 0 : index
    %c0_67 = arith.constant 0 : index
    %141 = vector.load %arg5[%140, %c0_66, %c0_67] : memref<8x2x128xf32, #tpu.memory_space<vmem>>, vector<1x2x128xf32>
    %142 = vector.shape_cast %141 : vector<1x2x128xf32> to vector<2x128xf32>
    %143 = vector.shape_cast %139 : vector<2x128xf32> to vector<1x2x128xf32>
    tpu.vector_store %arg5[%140, %c0_66, %c0_67], %143 {strides = array<i32>} : memref<8x2x128xf32, #tpu.memory_space<vmem>>, vector<1x2x128xf32>,
    %c5_i32 = arith.constant 5 : i32
    %cst_68 = arith.constant 0.000000e+00 : f32
    %144 = vector.broadcast %cst_68 : f32 to vector<2x128xf32>
    %145 = arith.subf %144, %132 : vector<2x128xf32>
    %146 = arith.addf %145, %138 : vector<2x128xf32>
    %cst_69 = arith.constant 1.000000e-01 : f32
    %147 = vector.broadcast %cst_69 : f32 to vector<2x128xf32>
    %148 = arith.mulf %147, %146 : vector<2x128xf32>
    %149 = arith.addf %132, %148 : vector<2x128xf32>
    %cst_70 = arith.constant 8.000000e-01 : f32
    %150 = vector.broadcast %cst_70 : f32 to vector<2x128xf32>
    %151 = arith.mulf %150, %138 : vector<2x128xf32>
    %cst_71 = arith.constant 1.000000e+00 : f32
    %152 = vector.broadcast %cst_71 : f32 to vector<2x128xf32>
    %153 = arith.cmpf ogt, %149, %152 : vector<2x128xf32>
    %154 = arith.extui %153 : vector<2x128xi1> to vector<2x128xi32>
    %155 = arith.sitofp %154 : vector<2x128xi32> to vector<2x128xf32>
    %156 = arith.truncf %155 : vector<2x128xf32> to vector<2x128xbf16>
    %cst_72 = arith.constant 0.000000e+00 : f32
    %157 = vector.broadcast %cst_72 : f32 to vector<2x128xf32>
    %158 = arith.select %153, %157, %149 : vector<2x128xi1>, vector<2x128xf32>
    %159 = arith.index_cast %c5_i32 : i32 to index
    %c0_73 = arith.constant 0 : index
    %c0_74 = arith.constant 0 : index
    %160 = vector.load %arg9[%159, %c0_73, %c0_74] : memref<8x2x128xf32, #tpu.memory_space<vmem>>, vector<1x2x128xf32>
    %161 = vector.shape_cast %160 : vector<1x2x128xf32> to vector<2x128xf32>
    %162 = arith.addf %151, %161 : vector<2x128xf32>
    %cst_75 = arith.constant dense<0.000000e+00> : vector<2x128xf32>
    %163 = tpu.matmul %130, %5, %cst_75 {dimension_numbers = #tpu.dot_dimension_numbers<[1], [0], [0], [1], [0, 0, 1, 1], [], []>} : vector<2x128xbf16>, vector<128x128xbf16>, vector<2x128xf32> -> vector<2x128xf32>
    %164 = arith.addf %162, %163 : vector<2x128xf32>
    %165 = arith.extf %156 : vector<2x128xbf16> to vector<2x128xf32>
    %166 = arith.index_cast %c5_i32 : i32 to index
    %c0_76 = arith.constant 0 : index
    %c0_77 = arith.constant 0 : index
    %167 = vector.load %arg5[%166, %c0_76, %c0_77] : memref<8x2x128xf32, #tpu.memory_space<vmem>>, vector<1x2x128xf32>
    %168 = vector.shape_cast %167 : vector<1x2x128xf32> to vector<2x128xf32>
    %169 = vector.shape_cast %165 : vector<2x128xf32> to vector<1x2x128xf32>
    tpu.vector_store %arg5[%166, %c0_76, %c0_77], %169 {strides = array<i32>} : memref<8x2x128xf32, #tpu.memory_space<vmem>>, vector<1x2x128xf32>,
    %c6_i32 = arith.constant 6 : i32
    %cst_78 = arith.constant 0.000000e+00 : f32
    %170 = vector.broadcast %cst_78 : f32 to vector<2x128xf32>
    %171 = arith.subf %170, %158 : vector<2x128xf32>
    %172 = arith.addf %171, %164 : vector<2x128xf32>
    %cst_79 = arith.constant 1.000000e-01 : f32
    %173 = vector.broadcast %cst_79 : f32 to vector<2x128xf32>
    %174 = arith.mulf %173, %172 : vector<2x128xf32>
    %175 = arith.addf %158, %174 : vector<2x128xf32>
    %cst_80 = arith.constant 8.000000e-01 : f32
    %176 = vector.broadcast %cst_80 : f32 to vector<2x128xf32>
    %177 = arith.mulf %176, %164 : vector<2x128xf32>
    %cst_81 = arith.constant 1.000000e+00 : f32
    %178 = vector.broadcast %cst_81 : f32 to vector<2x128xf32>
    %179 = arith.cmpf ogt, %175, %178 : vector<2x128xf32>
    %180 = arith.extui %179 : vector<2x128xi1> to vector<2x128xi32>
    %181 = arith.sitofp %180 : vector<2x128xi32> to vector<2x128xf32>
    %182 = arith.truncf %181 : vector<2x128xf32> to vector<2x128xbf16>
    %cst_82 = arith.constant 0.000000e+00 : f32
    %183 = vector.broadcast %cst_82 : f32 to vector<2x128xf32>
    %184 = arith.select %179, %183, %175 : vector<2x128xi1>, vector<2x128xf32>
    %185 = arith.index_cast %c6_i32 : i32 to index
    %c0_83 = arith.constant 0 : index
    %c0_84 = arith.constant 0 : index
    %186 = vector.load %arg9[%185, %c0_83, %c0_84] : memref<8x2x128xf32, #tpu.memory_space<vmem>>, vector<1x2x128xf32>
    %187 = vector.shape_cast %186 : vector<1x2x128xf32> to vector<2x128xf32>
    %188 = arith.addf %177, %187 : vector<2x128xf32>
    %cst_85 = arith.constant dense<0.000000e+00> : vector<2x128xf32>
    %189 = tpu.matmul %156, %5, %cst_85 {dimension_numbers = #tpu.dot_dimension_numbers<[1], [0], [0], [1], [0, 0, 1, 1], [], []>} : vector<2x128xbf16>, vector<128x128xbf16>, vector<2x128xf32> -> vector<2x128xf32>
    %190 = arith.addf %188, %189 : vector<2x128xf32>
    %191 = arith.extf %182 : vector<2x128xbf16> to vector<2x128xf32>
    %192 = arith.index_cast %c6_i32 : i32 to index
    %c0_86 = arith.constant 0 : index
    %c0_87 = arith.constant 0 : index
    %193 = vector.load %arg5[%192, %c0_86, %c0_87] : memref<8x2x128xf32, #tpu.memory_space<vmem>>, vector<1x2x128xf32>
    %194 = vector.shape_cast %193 : vector<1x2x128xf32> to vector<2x128xf32>
    %195 = vector.shape_cast %191 : vector<2x128xf32> to vector<1x2x128xf32>
    tpu.vector_store %arg5[%192, %c0_86, %c0_87], %195 {strides = array<i32>} : memref<8x2x128xf32, #tpu.memory_space<vmem>>, vector<1x2x128xf32>,
    %c7_i32 = arith.constant 7 : i32
    %cst_88 = arith.constant 0.000000e+00 : f32
    %196 = vector.broadcast %cst_88 : f32 to vector<2x128xf32>
    %197 = arith.subf %196, %184 : vector<2x128xf32>
    %198 = arith.addf %197, %190 : vector<2x128xf32>
    %cst_89 = arith.constant 1.000000e-01 : f32
    %199 = vector.broadcast %cst_89 : f32 to vector<2x128xf32>
    %200 = arith.mulf %199, %198 : vector<2x128xf32>
    %201 = arith.addf %184, %200 : vector<2x128xf32>
    %cst_90 = arith.constant 8.000000e-01 : f32
    %202 = vector.broadcast %cst_90 : f32 to vector<2x128xf32>
    %203 = arith.mulf %202, %190 : vector<2x128xf32>
    %cst_91 = arith.constant 1.000000e+00 : f32
    %204 = vector.broadcast %cst_91 : f32 to vector<2x128xf32>
    %205 = arith.cmpf ogt, %201, %204 : vector<2x128xf32>
    %206 = arith.extui %205 : vector<2x128xi1> to vector<2x128xi32>
    %207 = arith.sitofp %206 : vector<2x128xi32> to vector<2x128xf32>
    %208 = arith.truncf %207 : vector<2x128xf32> to vector<2x128xbf16>
    %cst_92 = arith.constant 0.000000e+00 : f32
    %209 = vector.broadcast %cst_92 : f32 to vector<2x128xf32>
    %210 = arith.select %205, %209, %201 : vector<2x128xi1>, vector<2x128xf32>
    %211 = arith.index_cast %c7_i32 : i32 to index
    %c0_93 = arith.constant 0 : index
    %c0_94 = arith.constant 0 : index
    %212 = vector.load %arg9[%211, %c0_93, %c0_94] : memref<8x2x128xf32, #tpu.memory_space<vmem>>, vector<1x2x128xf32>
    %213 = vector.shape_cast %212 : vector<1x2x128xf32> to vector<2x128xf32>
    %214 = arith.addf %203, %213 : vector<2x128xf32>
    %cst_95 = arith.constant dense<0.000000e+00> : vector<2x128xf32>
    %215 = tpu.matmul %182, %5, %cst_95 {dimension_numbers = #tpu.dot_dimension_numbers<[1], [0], [0], [1], [0, 0, 1, 1], [], []>} : vector<2x128xbf16>, vector<128x128xbf16>, vector<2x128xf32> -> vector<2x128xf32>
    %216 = arith.addf %214, %215 : vector<2x128xf32>
    %217 = arith.extf %208 : vector<2x128xbf16> to vector<2x128xf32>
    %218 = arith.index_cast %c7_i32 : i32 to index
    %c0_96 = arith.constant 0 : index
    %c0_97 = arith.constant 0 : index
    %219 = vector.load %arg5[%218, %c0_96, %c0_97] : memref<8x2x128xf32, #tpu.memory_space<vmem>>, vector<1x2x128xf32>
    %220 = vector.shape_cast %219 : vector<1x2x128xf32> to vector<2x128xf32>
    %221 = vector.shape_cast %217 : vector<2x128xf32> to vector<1x2x128xf32>
    tpu.vector_store %arg5[%218, %c0_96, %c0_97], %221 {strides = array<i32>} : memref<8x2x128xf32, #tpu.memory_space<vmem>>, vector<1x2x128xf32>,
    %c8_i32 = arith.constant 8 : i32
    %c0_98 = arith.constant 0 : index
    %c0_99 = arith.constant 0 : index
    %222 = vector.load %arg10[%c0_98, %c0_99] : memref<2x128xbf16, #tpu.memory_space<vmem>>, vector<2x128xbf16>
    tpu.vector_store %arg10[%c0_98, %c0_99], %208 {strides = array<i32>} : memref<2x128xbf16, #tpu.memory_space<vmem>>, vector<2x128xbf16>,
    %c0_100 = arith.constant 0 : index
    %c0_101 = arith.constant 0 : index
    %223 = vector.load %arg11[%c0_100, %c0_101] : memref<2x128xf32, #tpu.memory_space<vmem>>, vector<2x128xf32>
    tpu.vector_store %arg11[%c0_100, %c0_101], %210 {strides = array<i32>} : memref<2x128xf32, #tpu.memory_space<vmem>>, vector<2x128xf32>,
    %c0_102 = arith.constant 0 : index
    %c0_103 = arith.constant 0 : index
    %224 = vector.load %arg12[%c0_102, %c0_103] : memref<2x128xf32, #tpu.memory_space<vmem>>, vector<2x128xf32>
    tpu.vector_store %arg12[%c0_102, %c0_103], %216 {strides = array<i32>} : memref<2x128xf32, #tpu.memory_space<vmem>>, vector<2x128xf32>,
    %225 = arith.extui %0 : i1 to i32
    %c0_i32_104 = arith.constant 0 : i32
    %226 = arith.cmpi ne, %225, %c0_i32_104 : i32
    scf.if %226 {
      %227 = arith.extf %208 : vector<2x128xbf16> to vector<2x128xf32>
      %c0_105 = arith.constant 0 : index
      %c0_106 = arith.constant 0 : index
      %228 = vector.load %arg6[%c0_105, %c0_106] : memref<2x128xf32, #tpu.memory_space<vmem>>, vector<2x128xf32>
      tpu.vector_store %arg6[%c0_105, %c0_106], %227 {strides = array<i32>} : memref<2x128xf32, #tpu.memory_space<vmem>>, vector<2x128xf32>,
      %c0_107 = arith.constant 0 : index
      %c0_108 = arith.constant 0 : index
      %229 = vector.load %arg7[%c0_107, %c0_108] : memref<2x128xf32, #tpu.memory_space<vmem>>, vector<2x128xf32>
      tpu.vector_store %arg7[%c0_107, %c0_108], %210 {strides = array<i32>} : memref<2x128xf32, #tpu.memory_space<vmem>>, vector<2x128xf32>,
      %c0_109 = arith.constant 0 : index
      %c0_110 = arith.constant 0 : index
      %230 = vector.load %arg8[%c0_109, %c0_110] : memref<2x128xf32, #tpu.memory_space<vmem>>, vector<2x128xf32>
      tpu.vector_store %arg8[%c0_109, %c0_110], %216 {strides = array<i32>} : memref<2x128xf32, #tpu.memory_space<vmem>>, vector<2x128xf32>,
    } else {
    }
    return
  }
  func.func @transform_0(%arg0: i32, %arg1: i32) -> (i32, i32, i32) {
    %c0_i32 = arith.constant 0 : i32
    %c0_i32_0 = arith.constant 0 : i32
    return %arg1, %arg0, %c0_i32 : i32, i32, i32
  }
  func.func @transform_1(%arg0: i32, %arg1: i32) -> (i32, i32) {
    %c0_i32 = arith.constant 0 : i32
    %c0_i32_0 = arith.constant 0 : i32
    %c0_i32_1 = arith.constant 0 : i32
    return %c0_i32, %c0_i32_0 : i32, i32
  }
  func.func @transform_2(%arg0: i32, %arg1: i32) -> (i32, i32) {
    %c0_i32 = arith.constant 0 : i32
    %c0_i32_0 = arith.constant 0 : i32
    %c0_i32_1 = arith.constant 0 : i32
    return %c0_i32, %c0_i32_0 : i32, i32
  }
  func.func @transform_3(%arg0: i32, %arg1: i32) -> (i32, i32, i32) {
    %c0_i32 = arith.constant 0 : i32
    %c0_i32_0 = arith.constant 0 : i32
    return %arg1, %arg0, %c0_i32 : i32, i32, i32
  }
  func.func @transform_4(%arg0: i32, %arg1: i32) -> (i32, i32) {
    %c0_i32 = arith.constant 0 : i32
    %c0_i32_0 = arith.constant 0 : i32
    return %arg0, %c0_i32 : i32, i32
  }
  func.func @transform_5(%arg0: i32, %arg1: i32) -> (i32, i32) {
    %c0_i32 = arith.constant 0 : i32
    %c0_i32_0 = arith.constant 0 : i32
    return %arg0, %c0_i32 : i32, i32
  }
  func.func @transform_6(%arg0: i32, %arg1: i32) -> (i32, i32) {
    %c0_i32 = arith.constant 0 : i32
    %c0_i32_0 = arith.constant 0 : i32
    return %arg0, %c0_i32 : i32, i32
  }
}

</mosaic_0001>

<bundles_post_ra>
// kernel: tpu_custom_call.1
= control target key start
LH: loop header
LB: loop body
LE: loop exit
PB: predicated region body
PF: predicated region fallthrough
CT: control target
= control target key end

     0   :  { %12 = vsyncpa [#allocation7], 0  ;;  %s1061_s0 = inlined_call_operand.hbm [shape: bf16[8,2,128], index: 0, kind: input, shape index: {}]   ;;  %s1062_s1 = inlined_call_operand.hbm [shape: bf16[128,128], index: 1, kind: input, shape index: {}]   ;;  %s1063_s2 = inlined_call_operand.hbm [shape: bf16[128,128], index: 2, kind: input, shape index: {}]   ;;  %s1064_s3 = inlined_call_operand.hbm [shape: f32[8,2,128], index: 3, kind: output, shape index: {0}]   ;;  %s1065_s4 = inlined_call_operand.hbm [shape: f32[2,128], index: 4, kind: output, shape index: {1}]   ;;  %s1066_s5 = inlined_call_operand.hbm [shape: f32[2,128], index: 5, kind: output, shape index: {2}]   ;;  %s1067_s6 = inlined_call_operand.hbm [shape: f32[2,128], index: 6, kind: output, shape index: {3}]  }
   0x1   :  { %13 = vsyncpa [#allocation10], 0 }
   0x2   :  { %14 = vsyncpa [#allocation8], 0 }
   0x3   :  { %15 = vsyncpa [#allocation14], 0  ;;  %s34_s23 = sshll.u32 %s1062_s1, 4  ;;  %s35_s23 = int_to_ptr.hbm [resolvable:$true] %s34_s23 }
   0x4   :  { %16 = vsyncpa [#allocation17], 0  ;;  %s886_s24 = smov [#allocation9]   ;;  %s21_s28 = sshll.u32 %s1061_s0, 4  ;;  %s22_s28 = int_to_ptr.hbm [resolvable:$true] %s21_s28 }
   0x5   :  { %s36_s25 = sshll.u32 %s886_s24, 4  ;;  %s887_s29 = smov 64   ;;  %s37_s25 = int_to_ptr.vmem [resolvable:$true] %s36_s25 }
   0x6   :  { %s888_s30 = smov 4   ;;  %s889_s7 = smov [#allocation6]  }
   0x7   :  { %42 = dma.hbm_to_vmem [thread:$0]  %s35_s23, 1024, %s37_s25, [#allocation10], %s887_s29, %s887_s29, %s888_s30  }
   0x8   :  { %s23_s8 = sshll.u32 %s889_s7, 4  ;;  %s890_s9 = smov 16   ;;  %s24_s8 = int_to_ptr.vmem [resolvable:$true] %s23_s8 }
   0x9   :  { %s891_s10 = smov 1   ;;  %s47_s12 = sshll.u32 %s1063_s2, 4  ;;  %s48_s12 = int_to_ptr.hbm [resolvable:$true] %s47_s12 }
   0xa   :  { %29 = dma.hbm_to_vmem [thread:$0]  %s22_s28, 128, %s24_s8, [#allocation7], %s890_s9, %s890_s9, %s891_s10  }
   0xb   :  { %s892_s13 = smov [#allocation11]  }
   0xc   :  { %s49_s14 = sshll.u32 %s892_s13, 4  ;;  %s50_s14 = int_to_ptr.vmem [resolvable:$true] %s49_s14 }
   0xd   :  { %55 = dma.hbm_to_vmem [thread:$0]  %s48_s12, 1024, %s50_s14, [#allocation10], %s887_s29, %s887_s29, %s888_s30  }
   0xe   :  { %876 = dma.done.wait [#allocation7], 128  }
   0xf   :  { %877 = vsyncadd [#allocation7], 4294967168 }
  0x10   :  { %878 = dma.done.wait [#allocation10], 2048  }
  0x11   :  { %879 = vsyncadd [#allocation10], 4294965248  ;;  %v893_v0 = vmov 0.0   ;;  %v894_v1 = vmov 0   ;;  %v683_v2 = vld [vmem:[#allocation9 + $0x38] sm:$0xff]  ;;  %v682_v4 = vld [vmem:[#allocation9 + $0x30] sm:$0xff] }
  0x12   :  { %74 = vst [vmem:[#allocation4] sm:$0x3] %v893_v0  ;;  %v948_v3 = vld [vmem:[#allocation11 + $0x38] sm:$0xff]  ;;  %189 = vmatpush.bf16.msra.mxu0 %v683_v2  ;;  %v951_v5 = vld [vmem:[#allocation11 + $0x30] sm:$0xff]  ;;  %v681_v7 = vld [vmem:[#allocation9 + $0x28] sm:$0xff]  ;;  %s543_s15 = sshll.u32 %s1065_s4, 4  ;;  %s1047_s15 = int_to_ptr.hbm [resolvable:$true] %s543_s15 }
  0x13   :  { %73 = vst [vmem:[#allocation3] sm:$0x1] %v894_v1  ;;  %288 = vmatpush.bf16.msra.mxu1 %v948_v3  ;;  %317 = vmatpush.bf16.msra.mxu2 %v948_v3  ;;  %v108_v6 = vld [vmem:[#allocation6] sm:$0x1]  ;;  %v956_v8 = vld [vmem:[#allocation11 + $0x28] sm:$0xff]  ;;  %v680_v16 = vld [vmem:[#allocation9 + $0x20] sm:$0xff] }
  0x14   :  { %75 = vst [vmem:[#allocation5] sm:$0x3] %v893_v0  ;;  %347 = vmatpush.bf16.msra.mxu3 %v948_v3  ;;  %v109_v9 = vld [vmem:[#allocation6 + $0x1] sm:$0x1]  ;;  %v110_v10 = vld [vmem:[#allocation6 + $0x2] sm:$0x1] }
  0x15   :  { %v111_v11 = vld [vmem:[#allocation6 + $0x3] sm:$0x1]  ;;  %v112_v12 = vld [vmem:[#allocation6 + $0x4] sm:$0x1]  ;;  %117 = vst [vmem:[#allocation1] ss:$9 sm:$0xff] %v108_v6 }
  0x16   :  { %190 = vmatpush.bf16.msra.mxu0 %v682_v4  ;;  %120 = vst [vmem:[#allocation1 + $0x1] ss:$9 sm:$0xff] %v109_v9  ;;  %v963_v17 = vld [vmem:[#allocation11 + $0x20] sm:$0xff]  ;;  %v113_v18 = vld [vmem:[#allocation6 + $0x5] sm:$0x1]  ;;  %v678_v26 = vld [vmem:[#allocation9 + $0x10] sm:$0xff] }
  0x17   :  { %289 = vmatpush.bf16.msra.mxu1 %v951_v5  ;;  %318 = vmatpush.bf16.msra.mxu2 %v951_v5  ;;  %123 = vst [vmem:[#allocation1 + $0x2] ss:$9 sm:$0xff] %v110_v10  ;;  %v114_v19 = vld [vmem:[#allocation6 + $0x6] sm:$0x1]  ;;  %v115_v21 = vld [vmem:[#allocation6 + $0x7] sm:$0x1] }
  0x18   :  { %348 = vmatpush.bf16.msra.mxu3 %v951_v5  ;;  %126 = vst [vmem:[#allocation1 + $0x3] ss:$9 sm:$0xff] %v111_v11  ;;  %v679_v23 = vld [vmem:[#allocation9 + $0x18] sm:$0xff]  ;;  %v977_v27 = vld [vmem:[#allocation11 + $0x10] sm:$0xff]  ;;  %v677_v29 = vld [vmem:[#allocation9 + $0x8] sm:$0xff]  ;;  %s896_s16 = smov [#allocation13]  }
  0x19   :  { %v226_v13 = vld [vmem:[#allocation4] sm:$0x3]  ;;  %129 = vst [vmem:[#allocation1 + $0x4] ss:$9 sm:$0xff] %v112_v12  ;;  %v969_v24 = vld [vmem:[#allocation11 + $0x18] sm:$0xff]  ;;  %v685_v30 = vld [vmem:[#allocation11 + $0x8] sm:$0xff] }
  0x1a   :  { %v228_v15 = vsub.f32 0.0, %v226_v13  ;;  %191 = vmatpush.bf16.msra.mxu0 %v681_v7  ;;  %132 = vst [vmem:[#allocation1 + $0x5] ss:$9 sm:$0xff] %v113_v18  ;;  %v676_v31 = vld [vmem:[#allocation9] sm:$0xff]  ;;  %v225_v34 = vld [vmem:[#allocation3] sm:$0x1] }
  0x1b   :  { %v960_v14 = vld [vmem:[#allocation5] sm:$0x3]  ;;  %290 = vmatpush.bf16.msra.mxu1 %v956_v8  ;;  %319 = vmatpush.bf16.msra.mxu2 %v956_v8  ;;  %135 = vst [vmem:[#allocation1 + $0x6] ss:$9 sm:$0xff] %v114_v19  ;;  %v684_v32 = vld [vmem:[#allocation11] sm:$0xff]  ;;  %s1040_s17 = sshll.u32 %s896_s16, 4  ;;  %s542_s17 = int_to_ptr.vmem [resolvable:$true] %s1040_s17 }
  0x1c   :  { %v229_v20 = vadd.f32 %v228_v15, %v960_v14  ;;  %349 = vmatpush.bf16.msra.mxu3 %v956_v8  ;;  %138 = vst [vmem:[#allocation1 + $0x7] ss:$9 sm:$0xff] %v115_v21  ;;  %v895_v35 = vmov 1.0|1.0   ;;  %v232_v41 = vmul.f32 0.8, %v960_v14 }
  0x1d   :  { %s897_s18 = smov [#allocation12]   ;;  %s529_s22 = sshll.u32 %s1064_s3, 4  ;;  %s530_s22 = int_to_ptr.hbm [resolvable:$true] %s529_s22 }
  0x1e   :  { %v230_v22 = vmul.f32 0.1, %v229_v20  ;;  %192 = vmatpush.bf16.msra.mxu0 %v680_v16  ;;  %s1042_s19 = sshll.u32 %s897_s18, 4  ;;  %s898_s4 = smov [#allocation16]   ;;  %s528_s19 = int_to_ptr.vmem [resolvable:$true] %s1042_s19 }
  0x1f   :  { %291 = vmatpush.bf16.msra.mxu1 %v963_v17  ;;  %320 = vmatpush.bf16.msra.mxu2 %v963_v17  ;;  %s563_s23 = sshll.u32 %s898_s4, 4  ;;  %s565_s26 = sshll.u32 %s1067_s6, 4  ;;  %s564_s23 = int_to_ptr.vmem [resolvable:$true] %s563_s23  ;;  %s566_s26 = int_to_ptr.hbm [resolvable:$true] %s565_s26 }
  0x20   :  { %v972_v25 = vadd.f32 %v230_v22, %v226_v13  ;;  %350 = vmatpush.bf16.msra.mxu3 %v963_v17  ;;  %s899_s3 = smov [#allocation15]   ;;  %s554_s30 = sshll.u32 %s1066_s5, 4  ;;  %s555_s30 = int_to_ptr.hbm [resolvable:$true] %s554_s30 }
  0x21   :  { %s552_s27 = sshll.u32 %s899_s3, 4  ;;  %s900_s6 = smov 32   ;;  %s553_s27 = int_to_ptr.vmem [resolvable:$true] %s552_s27 }
  0x22   :  { %vm233_vm0 = vcmp.gt.f32.partialorder %v972_v25, 1.0  ;;  %193 = vmatpush.bf16.msra.mxu0 %v679_v23  ;;  %s901_s7 = smov 2  }
  0x23   :  { %292 = vmatpush.bf16.msra.mxu1 %v969_v24  ;;  %v622_v28 = vsel %vm233_vm0, 1.0, %v893_v0  ;;  %321 = vmatpush.bf16.msra.mxu2 %v969_v24  ;;  %v139_v33 = vld [vmem:[#allocation1] sm:$0xff]  ;;  %vm656_vm1 = vmpackc.low %vm233_vm0, %vm233_vm0  ;;  %v237_v42 = vsel %vm233_vm0, 0.0, %v972_v25 }
  0x24   :  { %303 = vst [vmem:[#allocation12] sm:$0x3] %v622_v28  ;;  %351 = vmatpush.bf16.msra.mxu3 %v969_v24  ;;  %v304_v45 = vsub.f32 0.0, %v237_v42 }
  0x26   :  { %194 = vmatpush.bf16.msra.mxu0 %v678_v26 }
  0x27   :  { %293 = vmatpush.bf16.msra.mxu1 %v977_v27  ;;  %322 = vmatpush.bf16.msra.mxu2 %v977_v27 }
  0x28   :  { %352 = vmatpush.bf16.msra.mxu3 %v977_v27 }
  0x2a   :  { %195 = vmatpush.bf16.msra.mxu0 %v677_v29 }
  0x2b   :  { %294 = vmatpush.bf16.msra.mxu1 %v685_v30  ;;  %323 = vmatpush.bf16.msra.mxu2 %v685_v30 }
  0x2c   :  { %353 = vmatpush.bf16.msra.mxu3 %v685_v30 }
  0x2e   :  { %196 = vmatpush.bf16.msra.mxu0 %v676_v31 }
  0x2f   :  { %295 = vmatpush.bf16.msra.mxu1 %v684_v32  ;;  %324 = vmatpush.bf16.msra.mxu2 %v684_v32 }
  0x30   :  { %354 = vmatpush.bf16.msra.mxu3 %v684_v32 }
  0x31   :  { %197 = vmatmul.bf16.vlgmr.msra.gmra.mxu0 %v139_v33 }
  0x32   :  { %377 = vmatpush.bf16.msrb.mxu0 %v948_v3  ;;  %296 = vmatmul.bf16.vlgmr.msra.gmra.mxu1 %v225_v34 }
  0x33   :  { %407 = vmatpush.bf16.msrb.mxu1 %v948_v3  ;;  %657 = vmatmul.msk.bf16.vlgmr.msra.gmra.mxu2 %vm656_vm1, %v895_v35 }
  0x34   :  { %467 = vmatpush.bf16.msrb.mxu3 %v948_v3  ;;  %437 = vmatpush.bf16.msrb.mxu2 %v948_v3 }
  0x36   :  { %378 = vmatpush.bf16.msrb.mxu0 %v951_v5 }
  0x37   :  { %408 = vmatpush.bf16.msrb.mxu1 %v951_v5 }
  0x38   :  { %468 = vmatpush.bf16.msrb.mxu3 %v951_v5  ;;  %438 = vmatpush.bf16.msrb.mxu2 %v951_v5 }
  0x3a   :  { %379 = vmatpush.bf16.msrb.mxu0 %v956_v8 }
  0x3b   :  { %409 = vmatpush.bf16.msrb.mxu1 %v956_v8 }
  0x3c   :  { %469 = vmatpush.bf16.msrb.mxu3 %v956_v8  ;;  %439 = vmatpush.bf16.msrb.mxu2 %v956_v8 }
  0x3e   :  { %380 = vmatpush.bf16.msrb.mxu0 %v963_v17 }
  0x3f   :  { %410 = vmatpush.bf16.msrb.mxu1 %v963_v17 }
  0x40   :  { %470 = vmatpush.bf16.msrb.mxu3 %v963_v17  ;;  %440 = vmatpush.bf16.msrb.mxu2 %v963_v17 }
  0x42   :  { %381 = vmatpush.bf16.msrb.mxu0 %v969_v24 }
  0x43   :  { %411 = vmatpush.bf16.msrb.mxu1 %v969_v24 }
  0x44   :  { %471 = vmatpush.bf16.msrb.mxu3 %v969_v24  ;;  %441 = vmatpush.bf16.msrb.mxu2 %v969_v24 }
  0x46   :  { %382 = vmatpush.bf16.msrb.mxu0 %v977_v27 }
  0x47   :  { %412 = vmatpush.bf16.msrb.mxu1 %v977_v27 }
  0x48   :  { %472 = vmatpush.bf16.msrb.mxu3 %v977_v27  ;;  %442 = vmatpush.bf16.msrb.mxu2 %v977_v27 }
  0x4a   :  { %383 = vmatpush.bf16.msrb.mxu0 %v685_v30 }
  0x4b   :  { %413 = vmatpush.bf16.msrb.mxu1 %v685_v30 }
  0x4c   :  { %473 = vmatpush.bf16.msrb.mxu3 %v685_v30  ;;  %443 = vmatpush.bf16.msrb.mxu2 %v685_v30 }
  0x4e   :  { %384 = vmatpush.bf16.msrb.mxu0 %v684_v32 }
  0x4f   :  { %414 = vmatpush.bf16.msrb.mxu1 %v684_v32 }
  0x50   :  { %474 = vmatpush.bf16.msrb.mxu3 %v684_v32  ;;  %444 = vmatpush.bf16.msrb.mxu2 %v684_v32 }
  0x52   :  { %497 = vmatpush.bf16.msra.mxu0 %v948_v3 }
  0x56   :  { %498 = vmatpush.bf16.msra.mxu0 %v951_v5 }
  0x5a   :  { %499 = vmatpush.bf16.msra.mxu0 %v956_v8 }
  0x5e   :  { %500 = vmatpush.bf16.msra.mxu0 %v963_v17 }
  0x62   :  { %501 = vmatpush.bf16.msra.mxu0 %v969_v24 }
  0x66   :  { %502 = vmatpush.bf16.msra.mxu0 %v977_v27 }
  0x6a   :  { %503 = vmatpush.bf16.msra.mxu0 %v685_v30 }
  0x6e   :  { %504 = vmatpush.bf16.msra.mxu0 %v684_v32 }
  0xae   :  { %v198_v36 = vpop.f32.mrf.mxu0 }
  0xaf   :  { %v297_v37 = vpop.f32.mrf.mxu1  ;;  %v205_v38 = vrot.slane %v198_v36, 2  ;;  %v206_v39 = vrot.slane %v198_v36, 4  ;;  %v207_v40 = vrot.slane %v198_v36, 6  ;;  %217 = vst [vmem:[#allocation2] sm:$0x3] %v198_v36 }
  0xb1   :  { %218 = vst [vmem:[#allocation2 + $0x2] sm:$0x3] %v205_v38 }
  0xb2   :  { %219 = vst [vmem:[#allocation2 + $0x4] sm:$0x3] %v206_v39 }
  0xb3   :  { %220 = vst [vmem:[#allocation2 + $0x6] sm:$0x3] %v207_v40 }
  0xb6   :  { %v326_v43 = vpop.f32.mrf.mxu2  ;;  %v238_v44 = vld [vmem:[#allocation2] sm:$0x3]  ;;  %v200_v46 = vpop.f32.mrf.mxu0 }
  0xb7   :  { %v299_v47 = vpop.f32.mrf.mxu1  ;;  %v239_v48 = vadd.f32 %v238_v44, %v232_v41  ;;  %v208_v49 = vrot.slane %v200_v46, 2  ;;  %v209_v50 = vrot.slane %v200_v46, 4  ;;  %v210_v51 = vrot.slane %v200_v46, 6  ;;  %221 = vst [vmem:[#allocation2 + $0x8] sm:$0x3] %v200_v46 }
  0xb8   :  { %v315_v57 = vld [vmem:[#allocation2 + $0x2] sm:$0x3] }
  0xb9   :  { %v301_v52 = vadd.f32 %v297_v37, %v239_v48  ;;  %222 = vst [vmem:[#allocation2 + $0xa] sm:$0x3] %v208_v49  ;;  %v345_v7 = vld [vmem:[#allocation2 + $0x4] sm:$0x3] }
  0xba   :  { %223 = vst [vmem:[#allocation2 + $0xc] sm:$0x3] %v209_v50  ;;  %v375_v16 = vld [vmem:[#allocation2 + $0x6] sm:$0x3] }
  0xbb   :  { %v305_v53 = vadd.f32 %v304_v45, %v301_v52  ;;  %v308_v54 = vmul.f32 0.8, %v301_v52  ;;  %224 = vst [vmem:[#allocation2 + $0xe] sm:$0x3] %v210_v51 }
  0xbd   :  { %v306_v55 = vmul.f32 0.1, %v305_v53  ;;  %v316_v59 = vadd.f32 %v315_v57, %v308_v54 }
  0xbe   :  { %v328_v56 = vpop.f32.mrf.mxu2  ;;  %v405_v31 = vld [vmem:[#allocation2 + $0x8] sm:$0x3] }
  0xbf   :  { %v307_v58 = vadd.f32 %v306_v55, %v237_v42  ;;  %v330_v62 = vadd.f32 %v326_v43, %v316_v59 }
  0xc0   :  { %v435_v44 = vld [vmem:[#allocation2 + $0xa] sm:$0x3] }
  0xc1   :  { %vm309_vm2 = vcmp.gt.f32.partialorder %v307_v58, 1.0  ;;  %v338_v6 = vmul.f32 0.8, %v330_v62  ;;  %v465_v56 = vld [vmem:[#allocation2 + $0xc] sm:$0x3] }
  0xc2   :  { %v655_v60 = vsel %vm309_vm2, 1.0, %v893_v0  ;;  %v313_v61 = vsel %vm309_vm2, 0.0, %v307_v58  ;;  %vm659_vm3 = vmpackc.low %vm309_vm2, %vm309_vm2 }
  0xc3   :  { %333 = vst [vmem:[#allocation12 + $0x2] sm:$0x3] %v655_v60  ;;  %v334_v63 = vsub.f32 0.0, %v313_v61  ;;  %660 = vmatmul.msk.bf16.vlgmr.msra.gmra.mxu3 %vm659_vm3, %v895_v35  ;;  %v346_v8 = vadd.f32 %v345_v7, %v338_v6 }
  0xc5   :  { %v335_v1 = vadd.f32 %v334_v63, %v330_v62 }
  0xc7   :  { %v336_v2 = vmul.f32 0.1, %v335_v1 }
  0xc9   :  { %v337_v3 = vadd.f32 %v336_v2, %v313_v61  ;;  %v495_v2 = vld [vmem:[#allocation2 + $0xe] sm:$0x3] }
  0xcb   :  { %vm339_vm4 = vcmp.gt.f32.partialorder %v337_v3, 1.0 }
  0xcc   :  { %v658_v4 = vsel %vm339_vm4, 1.0, %v893_v0  ;;  %vm662_vm5 = vmpackc.low %vm339_vm4, %vm339_vm4  ;;  %v343_v5 = vsel %vm339_vm4, 0.0, %v337_v3 }
  0xcd   :  { %363 = vst [vmem:[#allocation12 + $0x4] sm:$0x3] %v658_v4  ;;  %663 = vmatmul.msk.bf16.vlgmr.msrb.gmra.mxu0 %vm662_vm5, %v895_v35  ;;  %v364_v11 = vsub.f32 0.0, %v343_v5 }
 0x146   :  { %v356_v9 = vpop.f32.mrf.mxu3 }
 0x147   :  { %v360_v10 = vadd.f32 %v356_v9, %v346_v8 }
 0x149   :  { %v365_v12 = vadd.f32 %v364_v11, %v360_v10  ;;  %v368_v13 = vmul.f32 0.8, %v360_v10 }
 0x14a   :  { %v386_v14 = vpop.f32.mrf.mxu0 }
 0x14b   :  { %v366_v15 = vmul.f32 0.1, %v365_v12  ;;  %v376_v18 = vadd.f32 %v375_v16, %v368_v13 }
 0x14d   :  { %v367_v17 = vadd.f32 %v366_v15, %v343_v5  ;;  %v390_v22 = vadd.f32 %v386_v14, %v376_v18 }
 0x14e   :  { %v358_v19 = vpop.f32.mrf.mxu3 }
 0x14f   :  { %vm369_vm6 = vcmp.gt.f32.partialorder %v367_v17, 1.0  ;;  %v398_v30 = vmul.f32 0.8, %v390_v22 }
 0x150   :  { %v661_v20 = vsel %vm369_vm6, 1.0, %v893_v0  ;;  %v373_v21 = vsel %vm369_vm6, 0.0, %v367_v17  ;;  %vm665_vm7 = vmpackc.low %vm369_vm6, %vm369_vm6 }
 0x151   :  { %393 = vst [vmem:[#allocation12 + $0x6] sm:$0x3] %v661_v20  ;;  %v394_v23 = vsub.f32 0.0, %v373_v21  ;;  %666 = vmatmul.msk.bf16.vlgmr.msrb.gmra.mxu1 %vm665_vm7, %v895_v35  ;;  %v406_v32 = vadd.f32 %v405_v31, %v398_v30 }
 0x152   :  { %v388_v24 = vpop.f32.mrf.mxu0 }
 0x153   :  { %v395_v25 = vadd.f32 %v394_v23, %v390_v22 }
 0x155   :  { %v396_v26 = vmul.f32 0.1, %v395_v25 }
 0x157   :  { %v397_v27 = vadd.f32 %v396_v26, %v373_v21 }
 0x159   :  { %vm399_vm8 = vcmp.gt.f32.partialorder %v397_v27, 1.0 }
 0x15a   :  { %v664_v28 = vsel %vm399_vm8, 1.0, %v893_v0  ;;  %vm668_vm9 = vmpackc.low %vm399_vm8, %vm399_vm8  ;;  %v403_v29 = vsel %vm399_vm8, 0.0, %v397_v27 }
 0x15b   :  { %423 = vst [vmem:[#allocation12 + $0x8] sm:$0x3] %v664_v28  ;;  %669 = vmatmul.msk.bf16.vlgmr.msrb.gmra.mxu2 %vm668_vm9, %v895_v35  ;;  %v424_v36 = vsub.f32 0.0, %v403_v29 }
 0x1ce   :  { %v416_v33 = vpop.f32.mrf.mxu1 }
 0x1cf   :  { %v420_v34 = vadd.f32 %v416_v33, %v406_v32 }
 0x1d1   :  { %v425_v37 = vadd.f32 %v424_v36, %v420_v34  ;;  %v428_v42 = vmul.f32 0.8, %v420_v34 }
 0x1d3   :  { %v426_v38 = vmul.f32 0.1, %v425_v37  ;;  %v436_v45 = vadd.f32 %v435_v44, %v428_v42 }
 0x1d5   :  { %v427_v39 = vadd.f32 %v426_v38, %v403_v29 }
 0x1d6   :  { %v418_v40 = vpop.f32.mrf.mxu1 }
 0x1d7   :  { %vm429_vm10 = vcmp.gt.f32.partialorder %v427_v39, 1.0 }
 0x1d8   :  { %v667_v41 = vsel %vm429_vm10, 1.0, %v893_v0  ;;  %vm671_vm11 = vmpackc.low %vm429_vm10, %vm429_vm10  ;;  %v433_v43 = vsel %vm429_vm10, 0.0, %v427_v39 }
 0x1d9   :  { %453 = vst [vmem:[#allocation12 + $0xa] sm:$0x3] %v667_v41  ;;  %672 = vmatmul.msk.bf16.vlgmr.msrb.gmra.mxu3 %vm671_vm11, %v895_v35  ;;  %v454_v48 = vsub.f32 0.0, %v433_v43 }
 0x1de   :  { %v446_v46 = vpop.f32.mrf.mxu2 }
 0x1df   :  { %v450_v47 = vadd.f32 %v446_v46, %v436_v45 }
 0x1e1   :  { %v455_v49 = vadd.f32 %v454_v48, %v450_v47  ;;  %v458_v55 = vmul.f32 0.8, %v450_v47 }
 0x1e3   :  { %v456_v50 = vmul.f32 0.1, %v455_v49  ;;  %v466_v57 = vadd.f32 %v465_v56, %v458_v55 }
 0x1e5   :  { %v457_v51 = vadd.f32 %v456_v50, %v433_v43 }
 0x1e6   :  { %v448_v52 = vpop.f32.mrf.mxu2 }
 0x1e7   :  { %vm459_vm12 = vcmp.gt.f32.partialorder %v457_v51, 1.0 }
 0x1e8   :  { %v670_v53 = vsel %vm459_vm12, 1.0, %v893_v0  ;;  %vm674_vm13 = vmpackc.low %vm459_vm12, %vm459_vm12  ;;  %v463_v54 = vsel %vm459_vm12, 0.0, %v457_v51 }
 0x1e9   :  { %483 = vst [vmem:[#allocation12 + $0xc] sm:$0x3] %v670_v53  ;;  %675 = vmatmul.msk.bf16.vlgmr.msra.gmra.mxu0 %vm674_vm13, %v895_v35  ;;  %v484_v60 = vsub.f32 0.0, %v463_v54 }
 0x25c   :  { %v476_v58 = vpop.f32.mrf.mxu3 }
 0x25d   :  { %v480_v59 = vadd.f32 %v476_v58, %v466_v57 }
 0x25f   :  { %v485_v61 = vadd.f32 %v484_v60, %v480_v59  ;;  %v488_v62 = vmul.f32 0.8, %v480_v59 }
 0x261   :  { %v486_v35 = vmul.f32 0.1, %v485_v61  ;;  %v496_v3 = vadd.f32 %v495_v2, %v488_v62 }
 0x263   :  { %v487_v63 = vadd.f32 %v486_v35, %v463_v54 }
 0x264   :  { %v478_v1 = vpop.f32.mrf.mxu3 }
 0x265   :  { %vm489_vm14 = vcmp.gt.f32.partialorder %v487_v63, 1.0 }
 0x266   :  { %v506_v4 = vpop.f32.mrf.mxu0  ;;  %v673_v5 = vsel %vm489_vm14, 1.0, %v893_v0  ;;  %v493_v8 = vsel %vm489_vm14, 0.0, %v487_v63 }
 0x267   :  { %v510_v6 = vadd.f32 %v506_v4, %v496_v3  ;;  %v492_v7 = vpack.c.bf16 %v673_v5, %v673_v5  ;;  %513 = vst [vmem:[#allocation12 + $0xe] sm:$0x3] %v673_v5 }
 0x268   :  { %520 = vst [vmem:[#allocation13] sm:$0x3] %v673_v5  ;;  %535 = dma.vmem_to_hbm [thread:$0]  %s528_s19, 256, %s530_s22, [#allocation8], %s900_s6, %s900_s6, %s901_s7  }
 0x269   :  { %516 = vst [vmem:[#allocation5] sm:$0x3] %v510_v6  ;;  %546 = dma.vmem_to_hbm [thread:$0]  %s542_s17, 32, %s1047_s15, [#allocation14]  }
 0x26a   :  { %522 = vst [vmem:[#allocation16] sm:$0x3] %v510_v6 }
 0x26b   :  { %514 = vst [vmem:[#allocation3] sm:$0x1] %v492_v7  ;;  %568 = dma.vmem_to_hbm [thread:$0]  %s564_s23, 32, %s566_s26, [#allocation17]  }
 0x26c   :  { %515 = vst [vmem:[#allocation4] sm:$0x3] %v493_v8 }
 0x26d   :  { %521 = vst [vmem:[#allocation15] sm:$0x3] %v493_v8 }
 0x26e   :  { %v508_v0 = vpop.f32.mrf.mxu0  ;;  %557 = dma.vmem_to_hbm [thread:$0]  %s553_s27, 32, %s555_s30, [#allocation14]  }
 0x26f   :  { %880 = dma.done.wait [#allocation8], 256  }
 0x270   :  { %881 = vsyncadd [#allocation8], 4294967040 }
 0x271   :  { %882 = dma.done.wait [#allocation14], 64  }
 0x272   :  { %883 = vsyncadd [#allocation14], 4294967232 }
 0x273   :  { %884 = dma.done.wait [#allocation17], 32  }
 0x274   :  { %885 = vsyncadd [#allocation17], 4294967264 }
 0x275   :  { %585 = vsyncpa [#allocation7], 1 }
 0x276   :  { %586 = vsyncpa [#allocation10], 1 }
 0x277   :  { %587 = vsyncpa [#allocation8], 1 }
 0x278   :  { %588 = vsyncpa [#allocation14], 1 }
 0x279   :  { %589 = vsyncpa [#allocation17], 1 }

</bundles_post_ra>
